<compile_context>
chip_gen: v7x
topology: tpu7x:2x2x1
jax: 0.10.0
libtpu: 0.0.40
codegen_flags: <defaults>
</compile_context>

<pallas_src>
import jax
import jax.numpy as jnp
from jax import lax
from jax.experimental import pallas as pl
from jax.experimental.pallas import tpu as pltpu


def _se_kernel(x_ref, w1_ref, w2_ref, o_ref):
    """Fused SE forward for a block of `bb` batch elements.

    x_ref  : (bb, C, HW)  input activations (NCHW with spatial flattened)
    w1_ref : (C, HID)     first linear weight (transposed vs torch)
    w2_ref : (HID, C)     second linear weight (transposed vs torch)
    o_ref  : (bb, C, HW)  output
    """
    x = x_ref[...]                                   # single load, native dtype
    hw = x.shape[-1]

    # --- squeeze: global average pool over spatial (lane reduce), f32 acc ---
    y = jnp.sum(x, axis=-1, dtype=jnp.float32) * jnp.float32(1.0 / hw)   # (bb, C)

    # --- excitation: Linear -> GELU(exact erf) -> Linear -> Sigmoid (M = bb) ---
    h = jnp.dot(y, w1_ref[...].astype(jnp.float32),
                preferred_element_type=jnp.float32)                       # (bb, HID)
    h = 0.5 * h * (1.0 + lax.erf(h * jnp.float32(0.7071067811865476)))
    s = jax.nn.sigmoid(
        jnp.dot(h, w2_ref[...].astype(jnp.float32),
                preferred_element_type=jnp.float32))                      # (bb, C)

    # --- scale: f32 product (matches reference), gate broadcast over lanes ---
    o_ref[...] = (x * s[:, :, None]).astype(o_ref.dtype)


def _choose_bb(b, per_sample_bytes, target_bytes=4 << 20):
    """Largest divisor of b with block <= target bytes and grid length >= 2."""
    best = 1
    for bb in range(1, b + 1):
        if b % bb:
            continue
        if bb * per_sample_bytes > target_bytes:
            continue
        if b > 1 and (b // bb) < 2:
            continue        # keep >= 2 grid steps so both v7x TCs get work
        best = bb
    return best


def se_forward(x_nchw, w1, w2):
    """SE forward pass.

    x_nchw : (B, C, H, W)
    w1     : (HID, C)  torch Linear(oup, hid).weight
    w2     : (C, HID)  torch Linear(hid, oup).weight
    """
    b, c, h, w = x_nchw.shape
    hw = h * w
    hid = w1.shape[0]

    # Free view of contiguous NCHW -- no wrapper transpose traffic.
    x_flat = x_nchw.reshape(b, c, hw)                # (B, C, HW)

    # Pre-transpose weights so the kernel does plain y @ W.
    w1_t = w1.T                                      # (C, HID)
    w2_t = w2.T                                      # (HID, C)

    itemsize = jnp.dtype(x_nchw.dtype).itemsize
    per_sample_bytes = c * hw * itemsize
    bb = _choose_bb(b, per_sample_bytes)
    grid = (b // bb,)

    cost = pl.CostEstimate(
        flops=int(4 * b * c * hid),                      # two tiny matmuls
        transcendentals=int(b * (hid + c)),              # erf + sigmoid
        bytes_accessed=int(2 * b * hw * c * itemsize     # x read + out write
                           + (w1.size + w2.size) * jnp.dtype(w1.dtype).itemsize),
    )

    out_flat = pl.pallas_call(
        _se_kernel,
        out_shape=jax.ShapeDtypeStruct((b, c, hw), x_nchw.dtype),
        grid=grid,
        in_specs=[
            pl.BlockSpec((bb, c, hw), lambda i: (i, 0, 0)),   # batched sample slab
            pl.BlockSpec((c, hid), lambda i: (0, 0)),         # weights resident
            pl.BlockSpec((hid, c), lambda i: (0, 0)),
        ],
        out_specs=pl.BlockSpec((bb, c, hw), lambda i: (i, 0, 0)),
        compiler_params=pltpu.CompilerParams(
            dimension_semantics=("parallel",),
            # Explicit limit: 2 buffers x (in+out) 4 MiB blocks + weights
            # stays well under 32 MiB (and under v7x's 64 MiB physical VMEM).
            vmem_limit_bytes=32 * 1024 * 1024,
        ),
        cost_estimate=cost,
    )(x_flat, w1_t, w2_t)

    return out_flat.reshape(b, c, h, w)


def _se_reference(x_nchw, w1, w2):
    """Pure-JAX reference mirroring the PyTorch module (f32 compute)."""
    y = jnp.mean(x_nchw.astype(jnp.float32), axis=(2, 3))          # (B, C)
    h = y @ w1.T.astype(jnp.float32)
    h = 0.5 * h * (1.0 + lax.erf(h / jnp.sqrt(2.0)))
    s = jax.nn.sigmoid(h @ w2.T.astype(jnp.float32))
    return (x_nchw.astype(jnp.float32) * s[:, :, None, None]).astype(x_nchw.dtype)


def _run_case(key, b, c, h, w, hidden, dtype, atol, rtol):
    kx, k1, k2 = jax.random.split(key, 3)
    x = jax.random.normal(kx, (b, c, h, w), dtype=jnp.float32).astype(dtype)
    w1 = (jax.random.normal(k1, (hidden, c), dtype=jnp.float32) * 0.1).astype(dtype)
    w2 = (jax.random.normal(k2, (c, hidden), dtype=jnp.float32) * 0.1).astype(dtype)

    out = jax.block_until_ready(se_forward(x, w1, w2))
    ref = _se_reference(x, w1, w2)

    assert out.shape == (b, c, h, w)
    assert jnp.allclose(out.astype(jnp.float32), ref.astype(jnp.float32),
                        atol=atol, rtol=rtol), f"mismatch vs reference ({dtype})"


if __name__ == "__main__":
    key = jax.random.PRNGKey(0)
    k_a, k_b = jax.random.split(key)

    # Case 1: module config SE(inp=16, oup=16, expansion=0.25) -> hidden = 4
    #         f32, C=16, HW=256 (lane-dense spatial axis)
    _run_case(k_a, b=4, c=16, h=16, w=16, hidden=4,
              dtype=jnp.float32, atol=1e-5, rtol=1e-5)

    # Case 2: bf16, C=128 (exercises lane-width-128 channels and bf16 path)
    #         SE(inp=128, oup=128, expansion=0.25) -> hidden = 32
    _run_case(k_b, b=4, c=128, h=16, w=16, hidden=32,
              dtype=jnp.bfloat16, atol=5e-2, rtol=5e-2)

    print("KERNEL_OK")
</pallas_src>

<mosaic_0001>
module attributes {stable_mosaic.version = 11 : i64} {
  func.func @_se_kernel(%arg0: i32, %arg1: memref<2x16x256xf32, #tpu.memory_space<vmem>>, %arg2: memref<16x4xf32, #tpu.memory_space<vmem>>, %arg3: memref<4x16xf32, #tpu.memory_space<vmem>>, %arg4: memref<2x16x256xf32, #tpu.memory_space<vmem>>) attributes {dimension_semantics = [#tpu.dimension_semantics<parallel>], iteration_bounds = array<i64: 2>, scalar_prefetch = 0 : i64, scratch_operands = 0 : i64, tpu.core_type = #tpu.core_type<tc>, window_params = [{transform_indices = @transform_0, window_bounds = array<i64: 2, 16, 256>}, {pipeline_mode = #tpu.pipeline_mode<synchronous>, transform_indices = @transform_1, window_bounds = array<i64: 16, 4>}, {pipeline_mode = #tpu.pipeline_mode<synchronous>, transform_indices = @transform_2, window_bounds = array<i64: 4, 16>}, {transform_indices = @transform_3, window_bounds = array<i64: 2, 16, 256>}]} {
    %c0 = arith.constant 0 : index
    %c0_0 = arith.constant 0 : index
    %c0_1 = arith.constant 0 : index
    %0 = vector.load %arg1[%c0, %c0_0, %c0_1] : memref<2x16x256xf32, #tpu.memory_space<vmem>>, vector<2x16x256xf32>
    %cst = arith.constant dense<0.000000e+00> : vector<2x16xf32>
    %1 = vector.multi_reduction <add>, %0, %cst [2] : vector<2x16x256xf32> to vector<2x16xf32>
    %cst_2 = arith.constant 3.906250e-03 : f32
    %2 = vector.broadcast %cst_2 : f32 to vector<2x16xf32>
    %3 = arith.mulf %1, %2 : vector<2x16xf32>
    %c0_3 = arith.constant 0 : index
    %c0_4 = arith.constant 0 : index
    %4 = vector.load %arg2[%c0_3, %c0_4] : memref<16x4xf32, #tpu.memory_space<vmem>>, vector<16x4xf32>
    %cst_5 = arith.constant dense<0.000000e+00> : vector<2x4xf32>
    %5 = tpu.matmul %3, %4, %cst_5 {dimension_numbers = #tpu.dot_dimension_numbers<[1], [0], [0], [1], [0, 0, 1, 1], [], []>} : vector<2x16xf32>, vector<16x4xf32>, vector<2x4xf32> -> vector<2x4xf32>
    %cst_6 = arith.constant 5.000000e-01 : f32
    %6 = vector.broadcast %cst_6 : f32 to vector<2x4xf32>
    %7 = arith.mulf %6, %5 : vector<2x4xf32>
    %cst_7 = arith.constant 0.707106769 : f32
    %8 = vector.broadcast %cst_7 : f32 to vector<2x4xf32>
    %9 = arith.mulf %5, %8 : vector<2x4xf32>
    %10 = math.erf %9 : vector<2x4xf32>
    %cst_8 = arith.constant 1.000000e+00 : f32
    %11 = vector.broadcast %cst_8 : f32 to vector<2x4xf32>
    %12 = arith.addf %11, %10 : vector<2x4xf32>
    %13 = arith.mulf %7, %12 : vector<2x4xf32>
    %c0_9 = arith.constant 0 : index
    %c0_10 = arith.constant 0 : index
    %14 = vector.load %arg3[%c0_9, %c0_10] : memref<4x16xf32, #tpu.memory_space<vmem>>, vector<4x16xf32>
    %cst_11 = arith.constant dense<0.000000e+00> : vector<2x16xf32>
    %15 = tpu.matmul %13, %14, %cst_11 {dimension_numbers = #tpu.dot_dimension_numbers<[1], [0], [0], [1], [0, 0, 1, 1], [], []>} : vector<2x4xf32>, vector<4x16xf32>, vector<2x16xf32> -> vector<2x16xf32>
    %16 = arith.negf %15 : vector<2x16xf32>
    %17 = math.exp %16 : vector<2x16xf32>
    %cst_12 = arith.constant 1.000000e+00 : f32
    %18 = vector.broadcast %cst_12 : f32 to vector<2x16xf32>
    %19 = arith.addf %18, %17 : vector<2x16xf32>
    %20 = arith.divf %18, %19 : vector<2x16xf32>
    %21 = vector.shape_cast %20 : vector<2x16xf32> to vector<2x16x1xf32>
    %22 = vector.broadcast %21 : vector<2x16x1xf32> to vector<2x16x256xf32>
    %23 = arith.mulf %0, %22 : vector<2x16x256xf32>
    %c0_13 = arith.constant 0 : index
    %c0_14 = arith.constant 0 : index
    %c0_15 = arith.constant 0 : index
    %24 = vector.load %arg4[%c0_13, %c0_14, %c0_15] : memref<2x16x256xf32, #tpu.memory_space<vmem>>, vector<2x16x256xf32>
    tpu.vector_store %arg4[%c0_13, %c0_14, %c0_15], %23 {strides = array<i32>} : memref<2x16x256xf32, #tpu.memory_space<vmem>>, vector<2x16x256xf32>,
    return
  }
  func.func @transform_0(%arg0: i32) -> (i32, i32, i32) {
    %c0_i32 = arith.constant 0 : i32
    %c0_i32_0 = arith.constant 0 : i32
    %c0_i32_1 = arith.constant 0 : i32
    return %arg0, %c0_i32, %c0_i32_0 : i32, i32, i32
  }
  func.func @transform_1(%arg0: i32) -> (i32, i32) {
    %c0_i32 = arith.constant 0 : i32
    %c0_i32_0 = arith.constant 0 : i32
    %c0_i32_1 = arith.constant 0 : i32
    return %c0_i32, %c0_i32_0 : i32, i32
  }
  func.func @transform_2(%arg0: i32) -> (i32, i32) {
    %c0_i32 = arith.constant 0 : i32
    %c0_i32_0 = arith.constant 0 : i32
    %c0_i32_1 = arith.constant 0 : i32
    return %c0_i32, %c0_i32_0 : i32, i32
  }
  func.func @transform_3(%arg0: i32) -> (i32, i32, i32) {
    %c0_i32 = arith.constant 0 : i32
    %c0_i32_0 = arith.constant 0 : i32
    %c0_i32_1 = arith.constant 0 : i32
    return %arg0, %c0_i32, %c0_i32_0 : i32, i32, i32
  }
}

</mosaic_0001>

<bundles_post_ra>
// kernel: tpu_custom_call.1
= control target key start
LH: loop header
LB: loop body
LE: loop exit
PB: predicated region body
PF: predicated region fallthrough
CT: control target
= control target key end

     0   :  { %8 = vsyncpa [#allocation3], 0  ;;  %s972_s0 = inlined_call_operand.hbm [shape: f32[4,16,256], index: 0, kind: input, shape index: {}]   ;;  %s973_s1 = inlined_call_operand.vmem [shape: f32[16,4], index: 1, kind: input, shape index: {}]   ;;  %s974_s2 = inlined_call_operand.vmem [shape: f32[4,16], index: 2, kind: input, shape index: {}]   ;;  %s975_s3 = inlined_call_operand.hbm [shape: f32[4,16,256], index: 3, kind: output, shape index: {}]  }
   0x1   :  { %10 = vsyncpa [#allocation3 + $0x1], 0 }
   0x2   :  { %11 = vsyncpa [#allocation4], 0 }
   0x3   :  { %13 = vsyncpa [#allocation4 + $0x1], 0  ;;  %s765_s12 = smov 0   ;;  %s767_s13 = smov 0  }
   0x4   :  { %s769_s14 = smov 0   ;;  %s771_s15 = smov 0  }
   0x5 LB: > { %s786_s16 = sadd.s32 4294967295, %s734_s15   ;;  %s535_s17 = sadd.s32 4294967294, %s734_s15   ;;  %s734_s15 = sphi %s771_s15, %s988_s15   ;;  %s730_s14 = sphi %s769_s14, %s987_s14   ;;  %s726_s13 = sphi %s767_s13, %s986_s13   ;;  %s722_s12 = sphi %s765_s12, %s985_s12  }
   0x6   : > { %s790_s18 = sadd.s32 1, %s734_s15   ;;  %s26_s19 = sadd.s32 1, %s730_s14 }
   0x7   : > { %s23_s20 = ssub.s32 %s734_s15, %s790_s18  ;;  %p33_p0 = scmp.ne.s32.totalorder %s730_s14, %s726_s13 }
   0x8   : > { %p24_p1 = scmp.eq.s32.totalorder %s23_s20, 0  ;;  %p34_p2 = scmp.eq.s32.totalorder %s734_s15, 0 }
   0x9   : > { %p39_p3 = scmp.ne.s32.totalorder %s726_s13, %s722_s12  ;;  %p40_p4 = scmp.eq.s32.totalorder %s786_s16, 0 }
   0xa   : > { %s802_s21 = scalar_select %p24_p1, %s730_s14, %s26_s19  }
   0xb   : > { %p804_p5 = por %p34_p2, %p33_p0  ;;  %p808_p6 = por %p40_p4, %p39_p3 }
   0xc   : > { %p105_p7 = scmp.eq.s32.totalorder %s786_s16, 1  ;;  %p111_p8 = scmp.eq.s32.totalorder %s535_s17, 1 }
   0xd   : > { %p591_p10 = scmp.lt.s32.totalorder %s734_s15, 2  ;;  %s137_s26 = sand.u32 1, %s730_s14  }
   0xe   : > { %p815_p11 = por %p105_p7, %p33_p0  ;;  %p819_p12 = por %p111_p8, %p39_p3 }
   0xf   : > { %s556_s27 = sshll.u32 %s734_s15, 10  ;;  %s538_s28 = sshll.u32 %s137_s26, 6 }
  0x10   : > { %s979_s24 = scalar_select %p815_p11, 1, 0 }
  0x11   : > { %s980_s25 = scalar_select %p819_p12, 1, 0 }
  0x12   : > { %s828_s4 = scalar_lea.hbm %s972_s0, %s556_s27  ;;  %s141_s5 = scalar_lea.vmem [#allocation2], %s538_s28 }
  0x13   : > { %s149_s6 = sshll.u32 %s141_s5, 4  ;;  %p832_p13 = pnand %p591_p10, %p804_p5  ;;  %s836_s6 = int_to_ptr.vmem [resolvable:$true] %s149_s6 }
  0x14   : > { %s838_s8 = scalar_lea.sflag [#allocation3], %s137_s26  ;;  %s638_s9 = scalar_lea.hbm %s828_s4, 1024 }
  0x15   : > { %p639_p0 = scmp.ne.s32.totalorder %s828_s4, %s638_s9  ;;  %p640_p1 = pneg %p832_p13 }
  0x16   : > { %s643_s17 = scalar_lea.hbm %s972_s0, 2048  ;;  %p644_p4 = scmp.lt.u32.totalorder %s828_s4, %s972_s0 }
  0x17   : > { %p641_p2 = pnand %p640_p1, %p639_p0  ;;  %p645_p5 = scmp.lt.u32.totalorder %s643_s17, %s638_s9 }
  0x18   : > { %p647_p8 = scmp.lt.u32.totalorder %s638_s9, %s828_s4 }
  0x19   : > { %p642_p3 = pneg %p641_p2  ;;  %p646_p7 = por %p645_p5, %p644_p4 }
  0x1b   : > { %p648_p10 = por %p647_p8, %p646_p7 }
  0x1d   : > { %p649_p9 = pnand %p648_p10, %p642_p3 }
  0x1f   : > { %652 = shalt.err (!%p649_p9)
}
  0x20   : > { %s653_s22 = scalar_lea.vmem %s836_s6, 1024  ;;  %s736_s26 = smov [#allocation2]  }
  0x21   : > { %p654_p0 = scmp.ne.s32.totalorder %s836_s6, %s653_s22  ;;  %s658_s27 = sshll.u32 %s736_s26, 4  ;;  %s659_s27 = int_to_ptr.vmem [resolvable:$false] %s658_s27 }
  0x22   : > { %s660_s28 = scalar_lea.vmem %s659_s27, 2048  ;;  %p661_p11 = scmp.lt.s32.totalorder %s836_s6, %s659_s27 }
  0x23   : > { %p656_p2 = pnand %p654_p0, %p640_p1  ;;  %p662_p4 = scmp.lt.s32.totalorder %s660_s28, %s653_s22 }
  0x25   : > { %p657_p12 = pneg %p656_p2  ;;  %p663_p5 = por %p662_p4, %p661_p11 }
  0x27   : > { %p664_p7 = pnand %p663_p5, %p657_p12 }
  0x29   : > { %667 = shalt.err (!%p664_p7)
}
  0x2a   : > { %s737_s29 = smov 256   ;;  %s738_s30 = smov 16  }
  0x2b   : > { %586 = dma.hbm_to_vmem [thread:$0]  (!%p832_p13), %s828_s4, 1024, %s836_s6, %s838_s8, %s737_s29, %s737_s29, %s738_s30  }
  0x2c   : > { %p542_p9 = scmp.ge.s32.totalorder %s734_s15, 1  ;;  %p157_p1 = scmp.lt.s32.totalorder %s734_s15, 3 }
  0x2e   : > { %p158_p3 = pnand %p542_p9, %p157_p1 }
  0x2f   : > { %s869_s5 = sand.u32 (!%p158_p3), 1, %s726_s13  }
  0x30   : > { %161 = sbr.rel (%p158_p3) target bundleno = 821 (0x335), region = 32  ;;  %s543_s9 = sshll.u32 (!%p158_p3), %s869_s5, 6 }
  0x31   : > { %s164_s10 = scalar_lea.sflag (!%p158_p3), [#allocation3], %s869_s5  ;;  %s167_s11 = scalar_lea.vmem (!%p158_p3), [#allocation2], %s543_s9 }
  0x37   : > { %713 = dma.done.wait (%p808_p6), %s164_s10, 1024  }
  0x38   : > { %715 = vsyncadd (%p808_p6), %s164_s10, 4294966272  ;;  %v879_v0 = vld [vmem:[%s167_s11 + $0x20] sm:$0xff]  ;;  %v881_v1 = vld [vmem:[%s167_s11 + $0x28] sm:$0xff]  ;;  %v739_v15 = vmov 0.0|0.0   ;;  %vm740_vm0 = vmmov 0   ;;  %v741_v16 = vmov 0.0   ;;  %v222_v17 = vlaneseq }
  0x39   : > { %v883_v2 = vld [vmem:[%s167_s11] sm:$0xff]  ;;  %v206_v3 = vadd.f32 %v881_v1, %v879_v0  ;;  %v887_v4 = vld [vmem:[%s167_s11 + $0x8] sm:$0xff]  ;;  %v889_v5 = vld [vmem:[%s167_s11 + $0x30] sm:$0xff]  ;;  %576 = vmatprep.subr.bf16.mxu0 %v739_v15  ;;  %568 = vmatprep.mubr.msk.f32.mxu0 %vm740_vm0, %v741_v16  ;;  %vm233_vm1 = vcmask 130112   ;;  %vm244_vm2 = vcmask 1041409   ;;  %vm246_vm3 = vcmask 130048  }
  0x3a   : > { %v891_v6 = vld [vmem:[%s167_s11 + $0x38] sm:$0xff]  ;;  %v200_v7 = vadd.f32 %v887_v4, %v883_v2  ;;  %v895_v8 = vld [vmem:[%s167_s11 + $0x10] sm:$0xff]  ;;  %v216_v12 = vld [vmem:[%s973_s1] sm:$0xff]  ;;  %571 = vmatprep.subr.mxu1 %v741_v16  ;;  %573 = vmatprep.mubr.msk.f32.mxu1 %vm740_vm0, %v741_v16  ;;  %v223_v18 = vand.u32 127, %v222_v17  ;;  %v225_v19 = vshrl.u32 %v222_v17, 7  ;;  %vm329_vm4 = vcmask 1043456  }
  0x3b   : > { %v897_v9 = vld [vmem:[%s167_s11 + $0x18] sm:$0xff]  ;;  %207 = vadd.xlane.f32.xlu1 %v206_v3  ;;  %v209_v10 = vadd.f32 %v891_v6, %v889_v5  ;;  %v217_v13 = vld [vmem:[%s973_s1 + $0x8] sm:$0xff]  ;;  %v324_v38 = vld [vmem:[%s974_s2] sm:$0xf]  ;;  %vm325_vm5 = vcmask 31744   ;;  %s189_s19 = scalar_lea.vmem [#allocation5], %s543_s9 }
  0x3c   : > { %201 = vadd.xlane.f32.xlu0 %v200_v7  ;;  %v203_v11 = vadd.f32 %v897_v9, %v895_v8  ;;  %v577_v14 = vpack.c.bf16 %v217_v13, %v216_v12  ;;  %v228_v20 = vadd.s32 4294967288, %v223_v18  ;;  %v226_v23 = vsub.s32 %v223_v18, %v225_v19  ;;  %572 = vmatpush3.msk.msra.mxu1 %vm329_vm4, %v324_v38  ;;  %s462_s20 = sshll.u32 %s189_s19, 4  ;;  %s558_s22 = sshll.u32 %s786_s16, 10  ;;  %s921_s20 = int_to_ptr.vmem [resolvable:$true] %s462_s20 }
  0x3d   : > { %v411_v51 = vsub.s32 0, %v225_v19  ;;  %v422_v54 = vsub.s32 1, %v225_v19  ;;  %s926_s28 = scalar_lea.hbm %s975_s3, %s558_s22  ;;  %s448_s16 = scalar_lea.sflag [#allocation4], %s869_s5 }
  0x3e   : > { %578 = vmatpush3.bf16.msra.mxu0 %v577_v14  ;;  %v231_v25 = vsub.s32 %v228_v20, %v225_v19  ;;  %s668_s29 = scalar_lea.vmem %s921_s20, 1024  ;;  %p982_p11 = scmp.ne.s32.totalorder %s979_s24, 0 }
  0x3f   : > { %210 = vadd.xlane.f32.xlu1 %v209_v10  ;;  %p669_p6 = scmp.ne.s32.totalorder %s921_s20, %s668_s29  ;;  %s742_s30 = smov [#allocation5]  }
  0x40   : > { %204 = vadd.xlane.f32.xlu0 %v203_v11  ;;  %s672_s9 = sshll.u32 %s742_s30, 4  ;;  %s673_s9 = int_to_ptr.vmem [resolvable:$false] %s672_s9 }
  0x41   : > { %p670_p12 = pnand %p669_p6, %p982_p11  ;;  %s674_s10 = scalar_lea.vmem %s673_s9, 2048 }
  0x42   : > { %p675_p8 = scmp.lt.s32.totalorder %s921_s20, %s673_s9  ;;  %p676_p10 = scmp.lt.s32.totalorder %s674_s10, %s668_s29 }
  0x43   : > { %p671_p13 = pneg %p670_p12 }
  0x44   : > { %p677_p0 = por %p676_p10, %p675_p8 }
  0x46   : > { %p678_p2 = pnand %p677_p0, %p671_p13 }
  0xc8   : > { %v208_v21 = vpop.xlane.xlu1 %207 }
  0xc9   : > { %v202_v22 = vpop.xlane.xlu0 %201  ;;  %v214_v24 = vmul.f32 0.00390625, %v208_v21 }
  0xca   : > { %v212_v26 = vmul.f32 0.00390625, %v202_v22 }
  0xcb   : > { %v238_v31 = vrot.slane %v214_v24, %v226_v23 }
  0xcc   : > { %v211_v27 = vpop.xlane.xlu1 %210  ;;  %v227_v33 = vrot.slane %v212_v26, %v226_v23 }
  0xcd   : > { %v215_v28 = vmul.f32 0.00390625, %v211_v27  ;;  %v205_v29 = vpop.xlane.xlu0 %204 }
  0xce   : > { %v213_v30 = vmul.f32 0.00390625, %v205_v29 }
  0xcf   : > { %v242_v32 = vrot.slane %v215_v28, %v231_v25 }
  0xd0   : > { %v232_v34 = vrot.slane %v213_v30, %v231_v25 }
  0xd1   : > { %v243_v35 = vsel %vm233_vm1, %v242_v32, %v238_v31 }
  0xd2   : > { %v234_v36 = vsel %vm233_vm1, %v232_v34, %v227_v33 }
  0xd3   : > { %v245_v37 = vsel %vm244_vm2, %v243_v35, %v234_v36 }
  0xd4   : > { %569 = vmatmul.mubr.msk.f32.vlgmr.msra.gmra.mrb[0].mxu0 %vm246_vm3, %v245_v37 }
 0x1a7   : > { %v315_v39 = vpop.f32.mrb[0].mxu0 }
 0x1a8   : > { %v320_v40 = vmul.f32 0.70710677, %v315_v39  ;;  %v570_v41 = vpop.f32.mrb[1].mxu0  ;;  %v319_v43 = vmul.f32 0.5, %v315_v39 }
 0x1aa   : > { %632 = verf.f32 %v320_v40 }
 0x1b4   : > { %v633_v42 = vpop.eup %632 }
 0x1b5   : > { %v322_v44 = vadd.f32 1.0, %v633_v42 }
 0x1b7   : > { %v323_v45 = vmul.f32 %v322_v44, %v319_v43 }
 0x1b9   : > { %574 = vmatmul.mubr.msk.f32.vlgmr.msra.gmra.mrb[0].mxu1 %vm325_vm5, %v323_v45 }
 0x28c   : > { %v399_v46 = vpop.f32.mrb[0].mxu1 }
 0x28d   : > { %v548_v47 = vmul.f32 -1.442695, %v399_v46  ;;  %v575_v48 = vpop.f32.mrb[1].mxu1 }
 0x28f   : > { %634 = vpow2.f32 %v548_v47 }
 0x299   : > { %v635_v49 = vpop.eup %634 }
 0x29a   : > { %v406_v50 = vadd.f32 1.0, %v635_v49 }
 0x29c   : > { %636 = vrcp.f32 %v406_v50 }
 0x2a6   : > { %v637_v52 = vpop.eup %636 }
 0x2a7   : > { %v412_v53 = vrot.slane %v637_v52, %v411_v51  ;;  %v423_v55 = vrot.slane %v637_v52, %v422_v54 }
 0x2a9   : > { %418 = vbcast.lane.b32.xlu1 %v412_v53, 264  ;;  %414 = vbcast.lane.b32.xlu0 %v412_v53, 256 }
 0x2ad   : > { %425 = vbcast.lane.b32.xlu1 %v423_v55, 256 }
 0x2b1   : > { %429 = vbcast.lane.b32.xlu1 %v423_v55, 264 }
 0x31b   : > { %v419_v56 = vpop.permute.xlu1 %418  ;;  %v415_v57 = vpop.permute.xlu0 %414 }
 0x31c   : > { %v433_v58 = vmul.f32 %v419_v56, %v895_v8  ;;  %v434_v59 = vmul.f32 %v419_v56, %v897_v9  ;;  %v431_v60 = vmul.f32 %v415_v57, %v883_v2  ;;  %v432_v61 = vmul.f32 %v415_v57, %v887_v4 }
 0x31e   : > { %441 = vst [vmem:[%s189_s19 + $0x10] sm:$0xff] %v433_v58  ;;  %442 = vst [vmem:[%s189_s19 + $0x18] sm:$0xff] %v434_v59 }
 0x31f   : > { %439 = vst [vmem:[%s189_s19] sm:$0xff] %v431_v60  ;;  %440 = vst [vmem:[%s189_s19 + $0x8] sm:$0xff] %v432_v61  ;;  %v426_v62 = vpop.permute.xlu1 %425 }
 0x320   : > { %v435_v63 = vmul.f32 %v426_v62, %v879_v0  ;;  %v436_v3 = vmul.f32 %v426_v62, %v881_v1 }
 0x322   : > { %443 = vst [vmem:[%s189_s19 + $0x20] sm:$0xff] %v435_v63  ;;  %444 = vst [vmem:[%s189_s19 + $0x28] sm:$0xff] %v436_v3 }
 0x323   : > { %v430_v2 = vpop.permute.xlu1 %429 }
 0x324   : > { %v437_v4 = vmul.f32 %v430_v2, %v889_v5  ;;  %v438_v0 = vmul.f32 %v430_v2, %v891_v6 }
 0x326   : > { %445 = vst [vmem:[%s189_s19 + $0x30] sm:$0xff] %v437_v4  ;;  %446 = vst [vmem:[%s189_s19 + $0x38] sm:$0xff] %v438_v0 }
 0x327   : > { %681 = shalt.err (!%p678_p2)
}
 0x328   : > { %s682_s11 = scalar_lea.hbm %s926_s28, 1024  ;;  %s686_s6 = scalar_lea.hbm %s975_s3, 2048 }
 0x329   : > { %p683_p4 = scmp.ne.s32.totalorder %s926_s28, %s682_s11  ;;  %p687_p9 = scmp.lt.u32.totalorder %s926_s28, %s975_s3 }
 0x32a   : > { %p688_p1 = scmp.lt.u32.totalorder %s686_s6, %s682_s11  ;;  %p690_p6 = scmp.lt.u32.totalorder %s682_s11, %s926_s28 }
 0x32b   : > { %p684_p5 = pnand %p683_p4, %p982_p11 }
 0x32c   : > { %p689_p3 = por %p688_p1, %p687_p9 }
 0x32d   : > { %p685_p7 = pneg %p684_p5 }
 0x32e   : > { %p691_p12 = por %p690_p6, %p689_p3 }
 0x330   : > { %p692_p13 = pnand %p691_p12, %p685_p7 }
 0x332   : > { %695 = shalt.err (!%p692_p13)
}
 0x333   : > { %s743_s17 = smov 256   ;;  %s744_s19 = smov 16  }
 0x334   : > { %581 = dma.vmem_to_hbm [thread:$0]  (%p982_p11), %s921_s20, 1024, %s926_s28, %s448_s16, %s743_s17, %s743_s17, %s744_s19  }
 0x335 PF: > { %s477_s22 = sand.u32 1, %s722_s12   ;;  %p983_p8 = scmp.ne.s32.totalorder %s980_s25, 0 }
 0x336   : > { %p984_p10 = scmp.ge.s32.totalorder %s734_s15, 2  ;;  %s478_s26 = scalar_lea.sflag [#allocation4], %s477_s22 }
 0x338   : > { %p588_p0 = pnand %p984_p10, %p983_p8 }
 0x33a   : > { %717 = dma.done.wait (!%p588_p0), %s478_s26, 1024  }
 0x33b   : > { %719 = vsyncadd (!%p588_p0), %s478_s26, 4294966272  ;;  %p16_p2 = scmp.ge.s32.totalorder %s790_s18, 4   ;;  %s985_s12 = smov %s726_s13 }
 0x33c   : > { %s986_s13 = smov %s730_s14  ;;  %s987_s14 = smov %s802_s21 }
 0x33d   : > { %s988_s15 = smov %s790_s18  ;;  %18 = sbr.rel (!%p16_p2) target bundleno = 5 (0x5), region = 77 }
 0x344   :  { %483 = vsyncpa [#allocation3], 1 }
 0x345   :  { %485 = vsyncpa [#allocation3 + $0x1], 1 }
 0x346   :  { %486 = vsyncpa [#allocation4], 1 }
 0x347   :  { %488 = vsyncpa [#allocation4 + $0x1], 1 }

</bundles_post_ra>
